<compile_context>
chip_gen: v5e
topology: v5e:2x2
jax: 0.10.0
libtpu: 0.0.40
codegen_flags: <defaults>
</compile_context>

<pallas_src>
import jax
import jax.numpy as jnp
from jax.experimental import pallas as pl
from jax.experimental.pallas import tpu as pltpu


_MIB = 1024 * 1024


def _vmem_capacity_bytes():
    """Physical VMEM per TensorCore, with a conservative fallback."""
    try:
        return int(pltpu.get_tpu_info().vmem_capacity_bytes)
    except Exception:
        return 64 * _MIB  # safe for v5e/v6e (128 MiB) and v7x (64 MiB)


def _num_tensorcores():
    """Heuristic TensorCore count per chip (2 on v7x, 1 on v5e/v6e)."""
    try:
        kind = jax.devices()[0].device_kind.lower()
    except Exception:
        return 1
    return 2 if ("v7" in kind or "7x" in kind) else 1


def vec(x, *, vmem_budget_bytes=None):
    """x: (..., N, N). Returns (..., N*(N+1)//2), same dtype, row-major triu."""
    *batch, n1, n2 = x.shape
    assert n1 == n2, "Vec expects a square trailing (N, N) block"
    N = n1
    M = N * (N + 1) // 2

    B = 1
    for d in batch:
        B *= d
    x2 = x.reshape(B, N * N)  # lane-dense flat view of each (N, N) block

    itemsize = jnp.dtype(x.dtype).itemsize
    # Native sublane packing granularity: (32,128) int8/fp8, (16,128) bf16, (8,128) f32.
    sub = 32 if itemsize == 1 else (16 if itemsize == 2 else 8)
    row_bytes = (N * N + M) * itemsize  # in-row + out-row bytes per batch row

    vmem_cap = _vmem_capacity_bytes()
    num_tc = _num_tensorcores()

    if vmem_budget_bytes is None:
        # Budget for the double-buffered in+out pipeline, leaving headroom for
        # Mosaic internal scratch.  ~48 MiB on 128 MiB parts, ~40 MiB on v7x.
        vmem_budget_bytes = min(48 * _MIB, vmem_cap - 16 * _MIB)
        vmem_budget_bytes = max(vmem_budget_bytes, 8 * _MIB)
    vmem_budget_bytes = min(vmem_budget_bytes, vmem_cap - 8 * _MIB)

    # Largest sublane-multiple tile whose double-buffered footprint fits budget.
    tb = max(sub, (vmem_budget_bytes // (2 * row_bytes)) // sub * sub)
    b_ceil = -(-B // sub) * sub
    tb = min(tb, b_ceil)

    # Multi-TensorCore (v7x): make the number of grid steps a multiple of the
    # core count so both cores get equal work.  Single-TC parts keep the big tile.
    if num_tc > 1 and b_ceil > sub:
        grid_b = -(-B // tb)
        if grid_b % num_tc != 0:
            target_steps = grid_b + (num_tc - grid_b % num_tc)
            tb_new = -(-B // target_steps)        # rows per step (ceil)
            tb_new = -(-tb_new // sub) * sub      # round up to sublane multiple
            tb_new = max(tb_new, sub)
            if (-(-B // tb_new)) % num_tc == 0:
                tb = tb_new

    grid_b = -(-B // tb)
    B_pad = grid_b * tb
    if B_pad != B:
        x2 = jnp.pad(x2, ((0, B_pad - B), (0, 0)))

    # VMEM limit derived from the actual footprint (+ headroom), clamped to HW.
    vmem_limit = 2 * tb * row_bytes + 2 * _MIB
    vmem_limit = max(vmem_limit, 16 * _MIB)
    vmem_limit = min(vmem_limit, vmem_cap)

    def _vec_kernel(x_ref, o_ref):
        # Pure data movement: N static-offset segment stores, no concatenate,
        # no full-width (TB, M) value ever live in vregs.
        for i in range(N):
            off = i * N - i * (i - 1) // 2      # static output offset of row i
            o_ref[:, off:off + (N - i)] = x_ref[:, i * N + i:(i + 1) * N]

    out = pl.pallas_call(
        _vec_kernel,
        out_shape=jax.ShapeDtypeStruct((B_pad, M), x.dtype),
        grid_spec=pltpu.PrefetchScalarGridSpec(
            num_scalar_prefetch=0,
            grid=(grid_b,),
            in_specs=[pl.BlockSpec((tb, N * N), lambda i: (i, 0))],
            out_specs=pl.BlockSpec((tb, M), lambda i: (i, 0)),
        ),
        compiler_params=pltpu.CompilerParams(
            dimension_semantics=("parallel",),
            vmem_limit_bytes=int(vmem_limit),
        ),
    )(x2)

    out = out[:B]
    return out.reshape(*batch, M)


def _reference(x):
    """Pure-JAX reference: row-major upper triangle (incl. diagonal)."""
    N = x.shape[-1]
    rows, cols = jnp.triu_indices(N, k=0)  # row-major, same as bool-mask indexing
    return x[..., rows, cols]


if __name__ == "__main__":
    key = jax.random.PRNGKey(0)
    batch, channels, n = 2, 4, 16
    x = jax.random.normal(key, (batch, channels, n, n), dtype=jnp.float32)

    out = vec(x)
    jax.block_until_ready(out)

    ref = _reference(x)
    assert out.shape == ref.shape == (batch, channels, n * (n + 1) // 2)
    assert out.dtype == x.dtype
    assert jnp.array_equal(out, ref), "mismatch vs reference"

    print("KERNEL_OK")
</pallas_src>

<mosaic_0001>
module attributes {stable_mosaic.version = 11 : i64} {
  func.func @_vec_kernel(%arg0: i32, %arg1: memref<8x256xf32, #tpu.memory_space<vmem>>, %arg2: memref<8x136xf32, #tpu.memory_space<vmem>>) attributes {dimension_semantics = [#tpu.dimension_semantics<parallel>], iteration_bounds = array<i64: 1>, scalar_prefetch = 0 : i64, scratch_operands = 0 : i64, tpu.core_type = #tpu.core_type<tc>, window_params = [{transform_indices = @transform_0, window_bounds = array<i64: 8, 256>}, {transform_indices = @transform_1, window_bounds = array<i64: 8, 136>}]} {
    %c0 = arith.constant 0 : index
    %c0_0 = arith.constant 0 : index
    %0 = vector.load %arg1[%c0, %c0_0] : memref<8x256xf32, #tpu.memory_space<vmem>>, vector<8x16xf32>
    %c0_1 = arith.constant 0 : index
    %c0_2 = arith.constant 0 : index
    %1 = vector.load %arg2[%c0_1, %c0_2] : memref<8x136xf32, #tpu.memory_space<vmem>>, vector<8x16xf32>
    tpu.vector_store %arg2[%c0_1, %c0_2], %0 {strides = array<i32>} : memref<8x136xf32, #tpu.memory_space<vmem>>, vector<8x16xf32>,
    %c0_3 = arith.constant 0 : index
    %c17 = arith.constant 17 : index
    %2 = vector.load %arg1[%c0_3, %c17] : memref<8x256xf32, #tpu.memory_space<vmem>>, vector<8x15xf32>
    %c0_4 = arith.constant 0 : index
    %c16 = arith.constant 16 : index
    %3 = vector.load %arg2[%c0_4, %c16] : memref<8x136xf32, #tpu.memory_space<vmem>>, vector<8x15xf32>
    tpu.vector_store %arg2[%c0_4, %c16], %2 {strides = array<i32>} : memref<8x136xf32, #tpu.memory_space<vmem>>, vector<8x15xf32>,
    %c0_5 = arith.constant 0 : index
    %c34 = arith.constant 34 : index
    %4 = vector.load %arg1[%c0_5, %c34] : memref<8x256xf32, #tpu.memory_space<vmem>>, vector<8x14xf32>
    %c0_6 = arith.constant 0 : index
    %c31 = arith.constant 31 : index
    %5 = vector.load %arg2[%c0_6, %c31] : memref<8x136xf32, #tpu.memory_space<vmem>>, vector<8x14xf32>
    tpu.vector_store %arg2[%c0_6, %c31], %4 {strides = array<i32>} : memref<8x136xf32, #tpu.memory_space<vmem>>, vector<8x14xf32>,
    %c0_7 = arith.constant 0 : index
    %c51 = arith.constant 51 : index
    %6 = vector.load %arg1[%c0_7, %c51] : memref<8x256xf32, #tpu.memory_space<vmem>>, vector<8x13xf32>
    %c0_8 = arith.constant 0 : index
    %c45 = arith.constant 45 : index
    %7 = vector.load %arg2[%c0_8, %c45] : memref<8x136xf32, #tpu.memory_space<vmem>>, vector<8x13xf32>
    tpu.vector_store %arg2[%c0_8, %c45], %6 {strides = array<i32>} : memref<8x136xf32, #tpu.memory_space<vmem>>, vector<8x13xf32>,
    %c0_9 = arith.constant 0 : index
    %c68 = arith.constant 68 : index
    %8 = vector.load %arg1[%c0_9, %c68] : memref<8x256xf32, #tpu.memory_space<vmem>>, vector<8x12xf32>
    %c0_10 = arith.constant 0 : index
    %c58 = arith.constant 58 : index
    %9 = vector.load %arg2[%c0_10, %c58] : memref<8x136xf32, #tpu.memory_space<vmem>>, vector<8x12xf32>
    tpu.vector_store %arg2[%c0_10, %c58], %8 {strides = array<i32>} : memref<8x136xf32, #tpu.memory_space<vmem>>, vector<8x12xf32>,
    %c0_11 = arith.constant 0 : index
    %c85 = arith.constant 85 : index
    %10 = vector.load %arg1[%c0_11, %c85] : memref<8x256xf32, #tpu.memory_space<vmem>>, vector<8x11xf32>
    %c0_12 = arith.constant 0 : index
    %c70 = arith.constant 70 : index
    %11 = vector.load %arg2[%c0_12, %c70] : memref<8x136xf32, #tpu.memory_space<vmem>>, vector<8x11xf32>
    tpu.vector_store %arg2[%c0_12, %c70], %10 {strides = array<i32>} : memref<8x136xf32, #tpu.memory_space<vmem>>, vector<8x11xf32>,
    %c0_13 = arith.constant 0 : index
    %c102 = arith.constant 102 : index
    %12 = vector.load %arg1[%c0_13, %c102] : memref<8x256xf32, #tpu.memory_space<vmem>>, vector<8x10xf32>
    %c0_14 = arith.constant 0 : index
    %c81 = arith.constant 81 : index
    %13 = vector.load %arg2[%c0_14, %c81] : memref<8x136xf32, #tpu.memory_space<vmem>>, vector<8x10xf32>
    tpu.vector_store %arg2[%c0_14, %c81], %12 {strides = array<i32>} : memref<8x136xf32, #tpu.memory_space<vmem>>, vector<8x10xf32>,
    %c0_15 = arith.constant 0 : index
    %c119 = arith.constant 119 : index
    %14 = vector.load %arg1[%c0_15, %c119] : memref<8x256xf32, #tpu.memory_space<vmem>>, vector<8x9xf32>
    %c0_16 = arith.constant 0 : index
    %c91 = arith.constant 91 : index
    %15 = vector.load %arg2[%c0_16, %c91] : memref<8x136xf32, #tpu.memory_space<vmem>>, vector<8x9xf32>
    tpu.vector_store %arg2[%c0_16, %c91], %14 {strides = array<i32>} : memref<8x136xf32, #tpu.memory_space<vmem>>, vector<8x9xf32>,
    %c0_17 = arith.constant 0 : index
    %c136 = arith.constant 136 : index
    %16 = vector.load %arg1[%c0_17, %c136] : memref<8x256xf32, #tpu.memory_space<vmem>>, vector<8x8xf32>
    %c0_18 = arith.constant 0 : index
    %c100 = arith.constant 100 : index
    %17 = vector.load %arg2[%c0_18, %c100] : memref<8x136xf32, #tpu.memory_space<vmem>>, vector<8x8xf32>
    tpu.vector_store %arg2[%c0_18, %c100], %16 {strides = array<i32>} : memref<8x136xf32, #tpu.memory_space<vmem>>, vector<8x8xf32>,
    %c0_19 = arith.constant 0 : index
    %c153 = arith.constant 153 : index
    %18 = vector.load %arg1[%c0_19, %c153] : memref<8x256xf32, #tpu.memory_space<vmem>>, vector<8x7xf32>
    %c0_20 = arith.constant 0 : index
    %c108 = arith.constant 108 : index
    %19 = vector.load %arg2[%c0_20, %c108] : memref<8x136xf32, #tpu.memory_space<vmem>>, vector<8x7xf32>
    tpu.vector_store %arg2[%c0_20, %c108], %18 {strides = array<i32>} : memref<8x136xf32, #tpu.memory_space<vmem>>, vector<8x7xf32>,
    %c0_21 = arith.constant 0 : index
    %c170 = arith.constant 170 : index
    %20 = vector.load %arg1[%c0_21, %c170] : memref<8x256xf32, #tpu.memory_space<vmem>>, vector<8x6xf32>
    %c0_22 = arith.constant 0 : index
    %c115 = arith.constant 115 : index
    %21 = vector.load %arg2[%c0_22, %c115] : memref<8x136xf32, #tpu.memory_space<vmem>>, vector<8x6xf32>
    tpu.vector_store %arg2[%c0_22, %c115], %20 {strides = array<i32>} : memref<8x136xf32, #tpu.memory_space<vmem>>, vector<8x6xf32>,
    %c0_23 = arith.constant 0 : index
    %c187 = arith.constant 187 : index
    %22 = vector.load %arg1[%c0_23, %c187] : memref<8x256xf32, #tpu.memory_space<vmem>>, vector<8x5xf32>
    %c0_24 = arith.constant 0 : index
    %c121 = arith.constant 121 : index
    %23 = vector.load %arg2[%c0_24, %c121] : memref<8x136xf32, #tpu.memory_space<vmem>>, vector<8x5xf32>
    tpu.vector_store %arg2[%c0_24, %c121], %22 {strides = array<i32>} : memref<8x136xf32, #tpu.memory_space<vmem>>, vector<8x5xf32>,
    %c0_25 = arith.constant 0 : index
    %c204 = arith.constant 204 : index
    %24 = vector.load %arg1[%c0_25, %c204] : memref<8x256xf32, #tpu.memory_space<vmem>>, vector<8x4xf32>
    %c0_26 = arith.constant 0 : index
    %c126 = arith.constant 126 : index
    %25 = vector.load %arg2[%c0_26, %c126] : memref<8x136xf32, #tpu.memory_space<vmem>>, vector<8x4xf32>
    tpu.vector_store %arg2[%c0_26, %c126], %24 {strides = array<i32>} : memref<8x136xf32, #tpu.memory_space<vmem>>, vector<8x4xf32>,
    %c0_27 = arith.constant 0 : index
    %c221 = arith.constant 221 : index
    %26 = vector.load %arg1[%c0_27, %c221] : memref<8x256xf32, #tpu.memory_space<vmem>>, vector<8x3xf32>
    %c0_28 = arith.constant 0 : index
    %c130 = arith.constant 130 : index
    %27 = vector.load %arg2[%c0_28, %c130] : memref<8x136xf32, #tpu.memory_space<vmem>>, vector<8x3xf32>
    tpu.vector_store %arg2[%c0_28, %c130], %26 {strides = array<i32>} : memref<8x136xf32, #tpu.memory_space<vmem>>, vector<8x3xf32>,
    %c0_29 = arith.constant 0 : index
    %c238 = arith.constant 238 : index
    %28 = vector.load %arg1[%c0_29, %c238] : memref<8x256xf32, #tpu.memory_space<vmem>>, vector<8x2xf32>
    %c0_30 = arith.constant 0 : index
    %c133 = arith.constant 133 : index
    %29 = vector.load %arg2[%c0_30, %c133] : memref<8x136xf32, #tpu.memory_space<vmem>>, vector<8x2xf32>
    tpu.vector_store %arg2[%c0_30, %c133], %28 {strides = array<i32>} : memref<8x136xf32, #tpu.memory_space<vmem>>, vector<8x2xf32>,
    %c0_31 = arith.constant 0 : index
    %c255 = arith.constant 255 : index
    %30 = vector.load %arg1[%c0_31, %c255] : memref<8x256xf32, #tpu.memory_space<vmem>>, vector<8x1xf32>
    %c0_32 = arith.constant 0 : index
    %c135 = arith.constant 135 : index
    %31 = vector.load %arg2[%c0_32, %c135] : memref<8x136xf32, #tpu.memory_space<vmem>>, vector<8x1xf32>
    tpu.vector_store %arg2[%c0_32, %c135], %30 {strides = array<i32>} : memref<8x136xf32, #tpu.memory_space<vmem>>, vector<8x1xf32>,
    return
  }
  func.func @transform_0(%arg0: i32) -> (i32, i32) {
    %c0_i32 = arith.constant 0 : i32
    %c0_i32_0 = arith.constant 0 : i32
    return %arg0, %c0_i32 : i32, i32
  }
  func.func @transform_1(%arg0: i32) -> (i32, i32) {
    %c0_i32 = arith.constant 0 : i32
    %c0_i32_0 = arith.constant 0 : i32
    return %arg0, %c0_i32 : i32, i32
  }
}

</mosaic_0001>

<bundles_post_ra>
// kernel: tpu_custom_call.1
= control target key start
LH: loop header
LB: loop body
LE: loop exit
PB: predicated region body
PF: predicated region fallthrough
CT: control target
= control target key end

     0   :  { %6 = vsyncpa [#allocation3], 0  ;;  %s252_s0 = inlined_call_operand.hbm [shape: f32[8,256], index: 0, kind: input, shape index: {}]   ;;  %s253_s1 = inlined_call_operand.hbm [shape: f32[8,136], index: 1, kind: output, shape index: {}]  }
   0x1   :  { %7 = vsyncpa [#allocation4], 0  ;;  %s13_s8 = sshll.u32 %s252_s0, 4  ;;  %s219_s9 = smov [#allocation2]   ;;  %s14_s8 = int_to_ptr.hbm [resolvable:$true] %s13_s8 }
   0x2   :  { %s15_s10 = sshll.u32 %s219_s9, 4  ;;  %s16_s10 = int_to_ptr.vmem [resolvable:$true] %s15_s10 }
   0x3   :  { %18 = dma.hbm_to_vmem [thread:$0]  %s14_s8, 256, %s16_s10, [#allocation3]  }
   0x4   :  { %215 = dma.done.wait [#allocation3], 256  }
   0x5   :  { %216 = vsyncadd [#allocation3], 4294967040  ;;  %v40_v0 = vld [vmem:[#allocation2] sm:$0xff]  ;;  %s220_s11 = smov 122   ;;  %s221_s12 = smov 127   ;;  %v75_v1 = vld [vmem:[#allocation2 + $0x8] sm:$0xff] }
   0x6   :  { %42 = vrot.lane.b32.xlu1 %v40_v0, %s220_s11  ;;  %28 = vrot.lane.b32.xlu0 %v40_v0, %s221_s12  ;;  %s222_s13 = smov 113   ;;  %s223_s14 = smov 118   ;;  %vm24_vm0 = vcmask 130048   ;;  %vm31_vm1 = vcmask 253056   ;;  %vm38_vm2 = vcmask 367864   ;;  %vm45_vm3 = vcmask 474472  }
   0x7   :  { %56 = vrot.lane.b32.xlu2 %v40_v0, %s222_s13  ;;  %s224_s15 = smov 125   ;;  %s225_s16 = smov 107   ;;  %25 = vst.msk [vmem:[#allocation5] sm:$0xff] %vm24_vm0, %v40_v0  ;;  %vm52_vm4 = vcmask 572880   ;;  %vm59_vm5 = vcmask 663088   ;;  %vm66_vm6 = vcmask 745096  }
   0x8   :  { %s226_s0 = smov 92   ;;  %s227_s17 = smov 100   ;;  %vm73_vm7 = vcmask 818904   ;;  %vm80_vm8 = vcmask 884512   ;;  %vm87_vm9 = vcmask 941920   ;;  %vm94_vm10 = vcmask 991128  }
   0x9   :  { %s228_s18 = smov 83   ;;  %s229_s19 = smov 73   ;;  %vm110_vm11 = vcmask 15360   ;;  %vm117_vm12 = vcmask 39952   ;;  %vm124_vm13 = vcmask 56360   ;;  %vm101_vm14 = vcmask 1032136  }
   0xa   :  { %s230_s20 = smov 50   ;;  %s231_s21 = smov 37   ;;  %vm131_vm15 = vcmask 64568   ;;  %vm108_vm0 = vcmask 1048560  }
   0xb   :  { %s232_s22 = smov 23   ;;  %s233_s23 = smov 62  }
   0xc   :  { %s234_s24 = smov 8   ;;  %s235_s25 = smov [#allocation5]  }
   0xd   :  { %s138_s26 = sshll.u32 %s235_s25, 4  ;;  %s140_s29 = sshll.u32 %s253_s1, 4  ;;  %s139_s26 = int_to_ptr.vmem [resolvable:$true] %s138_s26  ;;  %s141_s29 = int_to_ptr.hbm [resolvable:$true] %s140_s29 }
   0xe   :  { %49 = vrot.lane.b32.xlu1 %v40_v0, %s223_s14  ;;  %35 = vrot.lane.b32.xlu0 %v40_v0, %s224_s15 }
   0xf   :  { %63 = vrot.lane.b32.xlu2 %v40_v0, %s225_s16 }
  0x16   :  { %77 = vrot.lane.b32.xlu1 %v75_v1, %s226_s0  ;;  %70 = vrot.lane.b32.xlu0 %v40_v0, %s227_s17 }
  0x17   :  { %84 = vrot.lane.b32.xlu2 %v75_v1, %s228_s18 }
  0x1e   :  { %91 = vrot.lane.b32.xlu1 %v75_v1, %s229_s19  ;;  %105 = vrot.lane.b32.xlu0 %v75_v1, %s230_s20 }
  0x1f   :  { %114 = vrot.lane.b32.xlu2 %v75_v1, %s231_s21 }
  0x26   :  { %121 = vrot.lane.b32.xlu1 %v75_v1, %s232_s22  ;;  %98 = vrot.lane.b32.xlu0 %v75_v1, %s233_s23 }
  0x27   :  { %128 = vrot.lane.b32.xlu2 %v75_v1, %s234_s24 }
  0x61   :  { %v57_v2 = vpop.permute.xlu2 %56 }
  0x69   :  { %v64_v5 = vpop.permute.xlu2 %63 }
  0x71   :  { %v85_v8 = vpop.permute.xlu2 %84 }
  0x78   :  { %v43_v3 = vpop.permute.xlu1 %42  ;;  %v29_v4 = vpop.permute.xlu0 %28 }
  0x79   :  { %32 = vst.msk [vmem:[#allocation5] sm:$0xff] %vm31_vm1, %v29_v4  ;;  %v115_v11 = vpop.permute.xlu2 %114 }
  0x80   :  { %v50_v6 = vpop.permute.xlu1 %49  ;;  %v36_v7 = vpop.permute.xlu0 %35 }
  0x81   :  { %39 = vst.msk [vmem:[#allocation5] sm:$0xff] %vm38_vm2, %v36_v7  ;;  %v129_v14 = vpop.permute.xlu2 %128 }
  0x82   :  { %46 = vst.msk [vmem:[#allocation5] sm:$0xff] %vm45_vm3, %v43_v3 }
  0x83   :  { %53 = vst.msk [vmem:[#allocation5] sm:$0xff] %vm52_vm4, %v50_v6 }
  0x84   :  { %60 = vst.msk [vmem:[#allocation5] sm:$0xff] %vm59_vm5, %v57_v2 }
  0x85   :  { %67 = vst.msk [vmem:[#allocation5] sm:$0xff] %vm66_vm6, %v64_v5 }
  0x88   :  { %v78_v9 = vpop.permute.xlu1 %77  ;;  %v71_v10 = vpop.permute.xlu0 %70 }
  0x89   :  { %74 = vst.msk [vmem:[#allocation5] sm:$0xff] %vm73_vm7, %v71_v10 }
  0x8a   :  { %81 = vst.msk [vmem:[#allocation5] sm:$0xff] %vm80_vm8, %v78_v9 }
  0x8b   :  { %88 = vst.msk [vmem:[#allocation5] sm:$0xff] %vm87_vm9, %v85_v8 }
  0x90   :  { %v92_v12 = vpop.permute.xlu1 %91  ;;  %v106_v13 = vpop.permute.xlu0 %105 }
  0x91   :  { %95 = vst.msk [vmem:[#allocation5] sm:$0xff] %vm94_vm10, %v92_v12 }
  0x92   :  { %111 = vst.msk [vmem:[#allocation5 + $0x8] sm:$0xff] %vm110_vm11, %v106_v13 }
  0x93   :  { %118 = vst.msk [vmem:[#allocation5 + $0x8] sm:$0xff] %vm117_vm12, %v115_v11 }
  0x98   :  { %v122_v15 = vpop.permute.xlu1 %121  ;;  %v99_v16 = vpop.permute.xlu0 %98 }
  0x99   :  { %125 = vst.msk [vmem:[#allocation5 + $0x8] sm:$0xff] %vm124_vm13, %v122_v15 }
  0x9a   :  { %102 = vst.msk [vmem:[#allocation5] sm:$0xff] %vm101_vm14, %v99_v16 }
  0x9b   :  { %132 = vst.msk [vmem:[#allocation5 + $0x8] sm:$0xff] %vm131_vm15, %v129_v14 }
  0x9c   :  { %109 = vst.msk [vmem:[#allocation5] sm:$0xff] %vm108_vm0, %v106_v13 }
  0x9d   :  { %143 = dma.vmem_to_hbm [thread:$0]  %s139_s26, 256, %s141_s29, [#allocation4]  }
  0x9e   :  { %217 = dma.done.wait [#allocation4], 256  }
  0x9f   :  { %218 = vsyncadd [#allocation4], 4294967040 }
  0xa0   :  { %148 = vsyncpa [#allocation3], 1 }
  0xa1   :  { %149 = vsyncpa [#allocation4], 1 }

</bundles_post_ra>
